<compile_context>
chip_gen: v6e
topology: v6e:2x2x1
jax: 0.10.0
libtpu: 0.0.40
codegen_flags: <defaults>
</compile_context>

<pallas_src>
import jax
import jax.numpy as jnp
from jax.experimental import pallas as pl
from jax.experimental.pallas import tpu as pltpu

EPS = 1e-5


# ----------------------------- in-kernel helpers -----------------------------

def _bn_relu(v, g_ref, b_ref, gather_ref, scatter_ref):
    """Training-mode BatchNorm + ReLU on a W-folded activation v: (N*H, W*C)."""
    C = g_ref.shape[-1]
    inv_cnt = 1.0 / float(v.shape[0] * (v.shape[1] // C))      # 1 / (N*H*W)

    # Single pass: first and second moments, gathered folded-lanes -> channels.
    sums = jnp.dot(v, gather_ref[...], preferred_element_type=jnp.float32)      # (rows, C)
    sqs = jnp.dot(v * v, gather_ref[...], preferred_element_type=jnp.float32)   # (rows, C)
    mean = jnp.sum(sums, axis=0, keepdims=True) * inv_cnt                       # (1, C)
    var = jnp.sum(sqs, axis=0, keepdims=True) * inv_cnt - mean * mean           # biased var

    scale_c = g_ref[...] * jax.lax.rsqrt(var + EPS)                             # (1, C)
    shift_c = b_ref[...] - mean * scale_c                                       # (1, C)

    # Channel -> folded-lane scatter (pad M to the native 8 sublanes).
    scale_l = jnp.dot(jnp.broadcast_to(scale_c, (8, C)), scatter_ref[...],
                      preferred_element_type=jnp.float32)[0:1, :]               # (1, W*C)
    shift_l = jnp.dot(jnp.broadcast_to(shift_c, (8, C)), scatter_ref[...],
                      preferred_element_type=jnp.float32)[0:1, :]               # (1, W*C)
    return jnp.maximum(v * scale_l + shift_l, 0.0)


def _conv3x3_folded(a, w_ref, has_above, has_below):
    """3x3 'same' conv, stride 1, on W-folded a: (N*H, W*Ci) -> (N*H, W*Co).

    H-taps = sublane rolls + image-boundary masks; W-taps and channel mixing
    are folded into the banded weight, so the conv is a single MXU matmul.
    """
    rows = a.shape[0]
    up = pltpu.roll(a, shift=1, axis=0) * has_above            # input row h-1 (0 at h==0)
    dn = pltpu.roll(a, shift=rows - 1, axis=0) * has_below     # input row h+1 (0 at h==H-1)
    col = jnp.concatenate([up, a, dn], axis=-1)                # (rows, 3*W*Ci)  im2col
    return jnp.dot(col, w_ref[...], preferred_element_type=jnp.float32)


def preact_basic_block_kernel(x_ref, above_ref, below_ref,
                              g1_ref, b1_ref, gat1_ref, sct1_ref, w1_ref,
                              g2_ref, b2_ref, gat2_ref, sct2_ref, w2_ref,
                              o_ref):
    above = above_ref[...]
    below = below_ref[...]

    a = _bn_relu(x_ref[...], g1_ref, b1_ref, gat1_ref, sct1_ref)
    y1 = _conv3x3_folded(a, w1_ref, above, below)

    b = _bn_relu(y1, g2_ref, b2_ref, gat2_ref, sct2_ref)
    y2 = _conv3x3_folded(b, w2_ref, above, below)

    # Pre-activation residual: add raw x (downsample=None, stride=1).
    # TODO(synk): stride>1 / downsample branch not implemented for this config.
    o_ref[...] = (y2 + x_ref[...]).astype(o_ref.dtype)


# ------------------------------ wrapper (XLA) --------------------------------

def _fold_conv3x3_weight(w_hwio, W):
    """HWIO (3,3,Ci,Co) -> banded (3*W*Ci, W*Co) acting on W-folded lanes."""
    KH, KW, Ci, Co = w_hwio.shape
    half = KW // 2
    blocks = []
    for dh in range(KH):
        acc = jnp.zeros((W, Ci, W, Co), jnp.float32)
        for dw in range(KW):
            off = dw - half                                     # input col = out col + off
            eye = jnp.eye(W, W, k=-off, dtype=jnp.float32)      # 1 where w_in = w_out + off
            acc = acc + jnp.einsum('pq,co->pcqo', eye,
                                   w_hwio[dh, dw].astype(jnp.float32))
        blocks.append(acc.reshape(W * Ci, W * Co))
    return jnp.concatenate(blocks, axis=0)                      # (3*W*Ci, W*Co)


def preact_basic_block(x_nhwc, g1, b1, w1_hwio, g2, b2, w2_hwio):
    N, H, W, C = x_nhwc.shape
    Co = w1_hwio.shape[-1]
    NH, WC, WCo = N * H, W * C, W * Co

    # Layout plumbing (free contiguous reshape): fold W into the lane axis.
    xf = x_nhwc.reshape(NH, WC).astype(jnp.float32)

    w1b = _fold_conv3x3_weight(w1_hwio, W)                      # (3*W*C,  W*Co)
    w2b = _fold_conv3x3_weight(w2_hwio, W)                      # (3*W*Co, W*Co)

    g1r = g1.reshape(1, C).astype(jnp.float32)
    b1r = b1.reshape(1, C).astype(jnp.float32)
    g2r = g2.reshape(1, Co).astype(jnp.float32)
    b2r = b2.reshape(1, Co).astype(jnp.float32)

    # One-hot gather (folded lane -> channel) and scatter (channel -> folded lane).
    gat1 = jnp.tile(jnp.eye(C, dtype=jnp.float32), (W, 1))      # (W*C, C)
    sct1 = gat1.T                                               # (C, W*C)
    gat2 = jnp.tile(jnp.eye(Co, dtype=jnp.float32), (W, 1))     # (W*Co, Co)
    sct2 = gat2.T

    # H-boundary masks for the sublane-rolled conv taps.
    h_idx = jnp.arange(NH) % H
    has_above = (h_idx > 0).astype(jnp.float32).reshape(NH, 1)
    has_below = (h_idx < H - 1).astype(jnp.float32).reshape(NH, 1)

    args = (xf, has_above, has_below,
            g1r, b1r, gat1, sct1, w1b,
            g2r, b2r, gat2, sct2, w2b)

    def full(shape):
        return pl.BlockSpec(shape, lambda i, nd=len(shape): (0,) * nd)

    flops = int(2 * NH * (3 * WC) * WCo + 2 * NH * (3 * WCo) * WCo
                + 8 * NH * WC)                                   # convs + BN (approx)
    bytes_accessed = int(sum(int(a.size) * a.dtype.itemsize for a in args)
                         + NH * WCo * 4)
    cost = pl.CostEstimate(flops=flops, transcendentals=C + Co,
                           bytes_accessed=bytes_accessed)

    # TODO(synk): BN batch statistics couple all rows, so multi-core (v7x) tiling
    # needs a separate stats pass; at these toy sizes a single grid step is fine.
    out = pl.pallas_call(
        preact_basic_block_kernel,
        out_shape=jax.ShapeDtypeStruct((NH, WCo), x_nhwc.dtype),
        grid=(1,),
        in_specs=[full(a.shape) for a in args],
        out_specs=full((NH, WCo)),
        compiler_params=pltpu.CompilerParams(
            dimension_semantics=("arbitrary",),
            vmem_limit_bytes=32 * 1024 * 1024),
        cost_estimate=cost,
    )(*args)

    return out.reshape(N, H, W, Co)


# ------------------------------ reference / main ------------------------------

def reference(x_nhwc, g1, b1, w1_hwio, g2, b2, w2_hwio):
    def bn_train(x, g, b):
        m = x.mean(axis=(0, 1, 2), keepdims=True)
        v = ((x - m) ** 2).mean(axis=(0, 1, 2), keepdims=True)
        return (x - m) / jnp.sqrt(v + EPS) * g.reshape(1, 1, 1, -1) + b.reshape(1, 1, 1, -1)

    def conv(x, w):
        return jax.lax.conv_general_dilated(
            x, w, window_strides=(1, 1), padding="SAME",
            dimension_numbers=("NHWC", "HWIO", "NHWC"))

    out = jax.nn.relu(bn_train(x_nhwc, g1, b1))
    out = conv(out, w1_hwio)
    out = jax.nn.relu(bn_train(out, g2, b2))
    out = conv(out, w2_hwio)
    return out + x_nhwc


if __name__ == "__main__":
    key = jax.random.PRNGKey(0)
    k_x, k_w1, k_w2, k_g1, k_b1, k_g2, k_b2 = jax.random.split(key, 7)

    N, C, H, W = 2, 4, 16, 16        # inplanes = planes = 4, stride = 1
    planes = 4

    # PyTorch-convention tensors (NCHW input, OIHW conv weights), deterministic init.
    x_nchw = jax.random.normal(k_x, (N, C, H, W), dtype=jnp.float32)
    w1_oihw = jax.random.normal(k_w1, (planes, C, 3, 3), dtype=jnp.float32) * 0.2
    w2_oihw = jax.random.normal(k_w2, (planes, planes, 3, 3), dtype=jnp.float32) * 0.2
    gamma1 = 1.0 + 0.1 * jax.random.normal(k_g1, (C,), dtype=jnp.float32)
    beta1 = 0.1 * jax.random.normal(k_b1, (C,), dtype=jnp.float32)
    gamma2 = 1.0 + 0.1 * jax.random.normal(k_g2, (planes,), dtype=jnp.float32)
    beta2 = 0.1 * jax.random.normal(k_b2, (planes,), dtype=jnp.float32)

    # Glue: NCHW -> NHWC, OIHW -> HWIO.
    x_nhwc = jnp.transpose(x_nchw, (0, 2, 3, 1))
    w1_hwio = jnp.transpose(w1_oihw, (2, 3, 1, 0))
    w2_hwio = jnp.transpose(w2_oihw, (2, 3, 1, 0))

    out = preact_basic_block(x_nhwc, gamma1, beta1, w1_hwio, gamma2, beta2, w2_hwio)
    out = jax.block_until_ready(out)

    ref = jax.block_until_ready(
        reference(x_nhwc, gamma1, beta1, w1_hwio, gamma2, beta2, w2_hwio))

    max_err = float(jnp.max(jnp.abs(out - ref)))
    assert max_err < 1e-2, f"mismatch vs reference: max |err| = {max_err}"

    # Back to PyTorch NCHW convention if needed downstream.
    out_nchw = jnp.transpose(out, (0, 3, 1, 2))
    assert out_nchw.shape == (N, C, H, W)

    print("KERNEL_OK")
</pallas_src>

<mosaic_0001>
module attributes {stable_mosaic.version = 11 : i64} {
  func.func @preact_basic_block_kernel(%arg0: i32, %arg1: memref<32x64xf32, #tpu.memory_space<vmem>>, %arg2: memref<32x1xf32, #tpu.memory_space<vmem>>, %arg3: memref<32x1xf32, #tpu.memory_space<vmem>>, %arg4: memref<1x4xf32, #tpu.memory_space<vmem>>, %arg5: memref<1x4xf32, #tpu.memory_space<vmem>>, %arg6: memref<64x4xf32, #tpu.memory_space<vmem>>, %arg7: memref<4x64xf32, #tpu.memory_space<vmem>>, %arg8: memref<192x64xf32, #tpu.memory_space<vmem>>, %arg9: memref<1x4xf32, #tpu.memory_space<vmem>>, %arg10: memref<1x4xf32, #tpu.memory_space<vmem>>, %arg11: memref<64x4xf32, #tpu.memory_space<vmem>>, %arg12: memref<4x64xf32, #tpu.memory_space<vmem>>, %arg13: memref<192x64xf32, #tpu.memory_space<vmem>>, %arg14: memref<32x64xf32, #tpu.memory_space<vmem>>) attributes {dimension_semantics = [#tpu.dimension_semantics<arbitrary>], iteration_bounds = array<i64: 1>, scalar_prefetch = 0 : i64, scratch_operands = 0 : i64, tpu.core_type = #tpu.core_type<tc>, window_params = [{pipeline_mode = #tpu.pipeline_mode<synchronous>, transform_indices = @transform_0, window_bounds = array<i64: 32, 64>}, {pipeline_mode = #tpu.pipeline_mode<synchronous>, transform_indices = @transform_1, window_bounds = array<i64: 32, 1>}, {pipeline_mode = #tpu.pipeline_mode<synchronous>, transform_indices = @transform_2, window_bounds = array<i64: 32, 1>}, {pipeline_mode = #tpu.pipeline_mode<synchronous>, transform_indices = @transform_3, window_bounds = array<i64: 1, 4>}, {pipeline_mode = #tpu.pipeline_mode<synchronous>, transform_indices = @transform_4, window_bounds = array<i64: 1, 4>}, {pipeline_mode = #tpu.pipeline_mode<synchronous>, transform_indices = @transform_5, window_bounds = array<i64: 64, 4>}, {pipeline_mode = #tpu.pipeline_mode<synchronous>, transform_indices = @transform_6, window_bounds = array<i64: 4, 64>}, {pipeline_mode = #tpu.pipeline_mode<synchronous>, transform_indices = @transform_7, window_bounds = array<i64: 192, 64>}, {pipeline_mode = #tpu.pipeline_mode<synchronous>, transform_indices = @transform_8, window_bounds = array<i64: 1, 4>}, {pipeline_mode = #tpu.pipeline_mode<synchronous>, transform_indices = @transform_9, window_bounds = array<i64: 1, 4>}, {pipeline_mode = #tpu.pipeline_mode<synchronous>, transform_indices = @transform_10, window_bounds = array<i64: 64, 4>}, {pipeline_mode = #tpu.pipeline_mode<synchronous>, transform_indices = @transform_11, window_bounds = array<i64: 4, 64>}, {pipeline_mode = #tpu.pipeline_mode<synchronous>, transform_indices = @transform_12, window_bounds = array<i64: 192, 64>}, {pipeline_mode = #tpu.pipeline_mode<synchronous>, transform_indices = @transform_13, window_bounds = array<i64: 32, 64>}]} {
    %c0 = arith.constant 0 : index
    %c0_0 = arith.constant 0 : index
    %0 = vector.load %arg2[%c0, %c0_0] : memref<32x1xf32, #tpu.memory_space<vmem>>, vector<32x1xf32>
    %c0_1 = arith.constant 0 : index
    %c0_2 = arith.constant 0 : index
    %1 = vector.load %arg3[%c0_1, %c0_2] : memref<32x1xf32, #tpu.memory_space<vmem>>, vector<32x1xf32>
    %c0_3 = arith.constant 0 : index
    %c0_4 = arith.constant 0 : index
    %2 = vector.load %arg1[%c0_3, %c0_4] : memref<32x64xf32, #tpu.memory_space<vmem>>, vector<32x64xf32>
    %c0_5 = arith.constant 0 : index
    %c0_6 = arith.constant 0 : index
    %3 = vector.load %arg6[%c0_5, %c0_6] : memref<64x4xf32, #tpu.memory_space<vmem>>, vector<64x4xf32>
    %cst = arith.constant dense<0.000000e+00> : vector<32x4xf32>
    %4 = tpu.matmul %2, %3, %cst {dimension_numbers = #tpu.dot_dimension_numbers<[1], [0], [0], [1], [0, 0, 1, 1], [], []>} : vector<32x64xf32>, vector<64x4xf32>, vector<32x4xf32> -> vector<32x4xf32>
    %5 = arith.mulf %2, %2 : vector<32x64xf32>
    %c0_7 = arith.constant 0 : index
    %c0_8 = arith.constant 0 : index
    %6 = vector.load %arg6[%c0_7, %c0_8] : memref<64x4xf32, #tpu.memory_space<vmem>>, vector<64x4xf32>
    %cst_9 = arith.constant dense<0.000000e+00> : vector<32x4xf32>
    %7 = tpu.matmul %5, %6, %cst_9 {dimension_numbers = #tpu.dot_dimension_numbers<[1], [0], [0], [1], [0, 0, 1, 1], [], []>} : vector<32x64xf32>, vector<64x4xf32>, vector<32x4xf32> -> vector<32x4xf32>
    %cst_10 = arith.constant dense<0.000000e+00> : vector<4xf32>
    %8 = vector.multi_reduction <add>, %4, %cst_10 [0] : vector<32x4xf32> to vector<4xf32>
    %9 = vector.shape_cast %8 : vector<4xf32> to vector<1x4xf32>
    %cst_11 = arith.constant 0.001953125 : f32
    %10 = vector.broadcast %cst_11 : f32 to vector<1x4xf32>
    %11 = arith.mulf %9, %10 : vector<1x4xf32>
    %cst_12 = arith.constant dense<0.000000e+00> : vector<4xf32>
    %12 = vector.multi_reduction <add>, %7, %cst_12 [0] : vector<32x4xf32> to vector<4xf32>
    %13 = vector.shape_cast %12 : vector<4xf32> to vector<1x4xf32>
    %cst_13 = arith.constant 0.001953125 : f32
    %14 = vector.broadcast %cst_13 : f32 to vector<1x4xf32>
    %15 = arith.mulf %13, %14 : vector<1x4xf32>
    %16 = arith.mulf %11, %11 : vector<1x4xf32>
    %17 = arith.subf %15, %16 : vector<1x4xf32>
    %c0_14 = arith.constant 0 : index
    %c0_15 = arith.constant 0 : index
    %18 = vector.load %arg4[%c0_14, %c0_15] : memref<1x4xf32, #tpu.memory_space<vmem>>, vector<1x4xf32>
    %cst_16 = arith.constant 9.99999974E-6 : f32
    %19 = vector.broadcast %cst_16 : f32 to vector<1x4xf32>
    %20 = arith.addf %17, %19 : vector<1x4xf32>
    %21 = math.rsqrt %20 : vector<1x4xf32>
    %22 = arith.mulf %18, %21 : vector<1x4xf32>
    %c0_17 = arith.constant 0 : index
    %c0_18 = arith.constant 0 : index
    %23 = vector.load %arg5[%c0_17, %c0_18] : memref<1x4xf32, #tpu.memory_space<vmem>>, vector<1x4xf32>
    %24 = arith.mulf %11, %22 : vector<1x4xf32>
    %25 = arith.subf %23, %24 : vector<1x4xf32>
    %26 = vector.shape_cast %22 : vector<1x4xf32> to vector<1x4xf32>
    %27 = vector.broadcast %26 : vector<1x4xf32> to vector<8x4xf32>
    %c0_19 = arith.constant 0 : index
    %c0_20 = arith.constant 0 : index
    %28 = vector.load %arg7[%c0_19, %c0_20] : memref<4x64xf32, #tpu.memory_space<vmem>>, vector<4x64xf32>
    %cst_21 = arith.constant dense<0.000000e+00> : vector<8x64xf32>
    %29 = tpu.matmul %27, %28, %cst_21 {dimension_numbers = #tpu.dot_dimension_numbers<[1], [0], [0], [1], [0, 0, 1, 1], [], []>} : vector<8x4xf32>, vector<4x64xf32>, vector<8x64xf32> -> vector<8x64xf32>
    %30 = vector.extract_strided_slice %29 {offsets = [0, 0], sizes = [1, 64], strides = [1, 1]} : vector<8x64xf32> to vector<1x64xf32>
    %31 = vector.shape_cast %25 : vector<1x4xf32> to vector<1x4xf32>
    %32 = vector.broadcast %31 : vector<1x4xf32> to vector<8x4xf32>
    %c0_22 = arith.constant 0 : index
    %c0_23 = arith.constant 0 : index
    %33 = vector.load %arg7[%c0_22, %c0_23] : memref<4x64xf32, #tpu.memory_space<vmem>>, vector<4x64xf32>
    %cst_24 = arith.constant dense<0.000000e+00> : vector<8x64xf32>
    %34 = tpu.matmul %32, %33, %cst_24 {dimension_numbers = #tpu.dot_dimension_numbers<[1], [0], [0], [1], [0, 0, 1, 1], [], []>} : vector<8x4xf32>, vector<4x64xf32>, vector<8x64xf32> -> vector<8x64xf32>
    %35 = vector.extract_strided_slice %34 {offsets = [0, 0], sizes = [1, 64], strides = [1, 1]} : vector<8x64xf32> to vector<1x64xf32>
    %36 = vector.broadcast %30 : vector<1x64xf32> to vector<32x64xf32>
    %37 = arith.mulf %2, %36 : vector<32x64xf32>
    %38 = vector.broadcast %35 : vector<1x64xf32> to vector<32x64xf32>
    %39 = arith.addf %37, %38 : vector<32x64xf32>
    %cst_25 = arith.constant 0.000000e+00 : f32
    %40 = vector.broadcast %cst_25 : f32 to vector<32x64xf32>
    %41 = arith.maximumf %39, %40 : vector<32x64xf32>
    %c1_i32 = arith.constant 1 : i32
    %42 = tpu.dynamic_rotate %41 by %c1_i32 dim 0 : vector<32x64xf32>, i32 -> vector<32x64xf32>
    %43 = vector.broadcast %0 : vector<32x1xf32> to vector<32x64xf32>
    %44 = arith.mulf %42, %43 : vector<32x64xf32>
    %c31_i32 = arith.constant 31 : i32
    %45 = tpu.dynamic_rotate %41 by %c31_i32 dim 0 : vector<32x64xf32>, i32 -> vector<32x64xf32>
    %46 = vector.broadcast %1 : vector<32x1xf32> to vector<32x64xf32>
    %47 = arith.mulf %45, %46 : vector<32x64xf32>
    %48 = tpu.concatenate %44, %41, %47 in 1 : vector<32x64xf32>, vector<32x64xf32>, vector<32x64xf32> -> vector<32x192xf32>
    %c0_26 = arith.constant 0 : index
    %c0_27 = arith.constant 0 : index
    %49 = vector.load %arg8[%c0_26, %c0_27] : memref<192x64xf32, #tpu.memory_space<vmem>>, vector<192x64xf32>
    %cst_28 = arith.constant dense<0.000000e+00> : vector<32x64xf32>
    %50 = tpu.matmul %48, %49, %cst_28 {dimension_numbers = #tpu.dot_dimension_numbers<[1], [0], [0], [1], [0, 0, 1, 1], [], []>} : vector<32x192xf32>, vector<192x64xf32>, vector<32x64xf32> -> vector<32x64xf32>
    %c0_29 = arith.constant 0 : index
    %c0_30 = arith.constant 0 : index
    %51 = vector.load %arg11[%c0_29, %c0_30] : memref<64x4xf32, #tpu.memory_space<vmem>>, vector<64x4xf32>
    %cst_31 = arith.constant dense<0.000000e+00> : vector<32x4xf32>
    %52 = tpu.matmul %50, %51, %cst_31 {dimension_numbers = #tpu.dot_dimension_numbers<[1], [0], [0], [1], [0, 0, 1, 1], [], []>} : vector<32x64xf32>, vector<64x4xf32>, vector<32x4xf32> -> vector<32x4xf32>
    %53 = arith.mulf %50, %50 : vector<32x64xf32>
    %c0_32 = arith.constant 0 : index
    %c0_33 = arith.constant 0 : index
    %54 = vector.load %arg11[%c0_32, %c0_33] : memref<64x4xf32, #tpu.memory_space<vmem>>, vector<64x4xf32>
    %cst_34 = arith.constant dense<0.000000e+00> : vector<32x4xf32>
    %55 = tpu.matmul %53, %54, %cst_34 {dimension_numbers = #tpu.dot_dimension_numbers<[1], [0], [0], [1], [0, 0, 1, 1], [], []>} : vector<32x64xf32>, vector<64x4xf32>, vector<32x4xf32> -> vector<32x4xf32>
    %cst_35 = arith.constant dense<0.000000e+00> : vector<4xf32>
    %56 = vector.multi_reduction <add>, %52, %cst_35 [0] : vector<32x4xf32> to vector<4xf32>
    %57 = vector.shape_cast %56 : vector<4xf32> to vector<1x4xf32>
    %cst_36 = arith.constant 0.001953125 : f32
    %58 = vector.broadcast %cst_36 : f32 to vector<1x4xf32>
    %59 = arith.mulf %57, %58 : vector<1x4xf32>
    %cst_37 = arith.constant dense<0.000000e+00> : vector<4xf32>
    %60 = vector.multi_reduction <add>, %55, %cst_37 [0] : vector<32x4xf32> to vector<4xf32>
    %61 = vector.shape_cast %60 : vector<4xf32> to vector<1x4xf32>
    %cst_38 = arith.constant 0.001953125 : f32
    %62 = vector.broadcast %cst_38 : f32 to vector<1x4xf32>
    %63 = arith.mulf %61, %62 : vector<1x4xf32>
    %64 = arith.mulf %59, %59 : vector<1x4xf32>
    %65 = arith.subf %63, %64 : vector<1x4xf32>
    %c0_39 = arith.constant 0 : index
    %c0_40 = arith.constant 0 : index
    %66 = vector.load %arg9[%c0_39, %c0_40] : memref<1x4xf32, #tpu.memory_space<vmem>>, vector<1x4xf32>
    %cst_41 = arith.constant 9.99999974E-6 : f32
    %67 = vector.broadcast %cst_41 : f32 to vector<1x4xf32>
    %68 = arith.addf %65, %67 : vector<1x4xf32>
    %69 = math.rsqrt %68 : vector<1x4xf32>
    %70 = arith.mulf %66, %69 : vector<1x4xf32>
    %c0_42 = arith.constant 0 : index
    %c0_43 = arith.constant 0 : index
    %71 = vector.load %arg10[%c0_42, %c0_43] : memref<1x4xf32, #tpu.memory_space<vmem>>, vector<1x4xf32>
    %72 = arith.mulf %59, %70 : vector<1x4xf32>
    %73 = arith.subf %71, %72 : vector<1x4xf32>
    %74 = vector.shape_cast %70 : vector<1x4xf32> to vector<1x4xf32>
    %75 = vector.broadcast %74 : vector<1x4xf32> to vector<8x4xf32>
    %c0_44 = arith.constant 0 : index
    %c0_45 = arith.constant 0 : index
    %76 = vector.load %arg12[%c0_44, %c0_45] : memref<4x64xf32, #tpu.memory_space<vmem>>, vector<4x64xf32>
    %cst_46 = arith.constant dense<0.000000e+00> : vector<8x64xf32>
    %77 = tpu.matmul %75, %76, %cst_46 {dimension_numbers = #tpu.dot_dimension_numbers<[1], [0], [0], [1], [0, 0, 1, 1], [], []>} : vector<8x4xf32>, vector<4x64xf32>, vector<8x64xf32> -> vector<8x64xf32>
    %78 = vector.extract_strided_slice %77 {offsets = [0, 0], sizes = [1, 64], strides = [1, 1]} : vector<8x64xf32> to vector<1x64xf32>
    %79 = vector.shape_cast %73 : vector<1x4xf32> to vector<1x4xf32>
    %80 = vector.broadcast %79 : vector<1x4xf32> to vector<8x4xf32>
    %c0_47 = arith.constant 0 : index
    %c0_48 = arith.constant 0 : index
    %81 = vector.load %arg12[%c0_47, %c0_48] : memref<4x64xf32, #tpu.memory_space<vmem>>, vector<4x64xf32>
    %cst_49 = arith.constant dense<0.000000e+00> : vector<8x64xf32>
    %82 = tpu.matmul %80, %81, %cst_49 {dimension_numbers = #tpu.dot_dimension_numbers<[1], [0], [0], [1], [0, 0, 1, 1], [], []>} : vector<8x4xf32>, vector<4x64xf32>, vector<8x64xf32> -> vector<8x64xf32>
    %83 = vector.extract_strided_slice %82 {offsets = [0, 0], sizes = [1, 64], strides = [1, 1]} : vector<8x64xf32> to vector<1x64xf32>
    %84 = vector.broadcast %78 : vector<1x64xf32> to vector<32x64xf32>
    %85 = arith.mulf %50, %84 : vector<32x64xf32>
    %86 = vector.broadcast %83 : vector<1x64xf32> to vector<32x64xf32>
    %87 = arith.addf %85, %86 : vector<32x64xf32>
    %cst_50 = arith.constant 0.000000e+00 : f32
    %88 = vector.broadcast %cst_50 : f32 to vector<32x64xf32>
    %89 = arith.maximumf %87, %88 : vector<32x64xf32>
    %c1_i32_51 = arith.constant 1 : i32
    %90 = tpu.dynamic_rotate %89 by %c1_i32_51 dim 0 : vector<32x64xf32>, i32 -> vector<32x64xf32>
    %91 = vector.broadcast %0 : vector<32x1xf32> to vector<32x64xf32>
    %92 = arith.mulf %90, %91 : vector<32x64xf32>
    %c31_i32_52 = arith.constant 31 : i32
    %93 = tpu.dynamic_rotate %89 by %c31_i32_52 dim 0 : vector<32x64xf32>, i32 -> vector<32x64xf32>
    %94 = vector.broadcast %1 : vector<32x1xf32> to vector<32x64xf32>
    %95 = arith.mulf %93, %94 : vector<32x64xf32>
    %96 = tpu.concatenate %92, %89, %95 in 1 : vector<32x64xf32>, vector<32x64xf32>, vector<32x64xf32> -> vector<32x192xf32>
    %c0_53 = arith.constant 0 : index
    %c0_54 = arith.constant 0 : index
    %97 = vector.load %arg13[%c0_53, %c0_54] : memref<192x64xf32, #tpu.memory_space<vmem>>, vector<192x64xf32>
    %cst_55 = arith.constant dense<0.000000e+00> : vector<32x64xf32>
    %98 = tpu.matmul %96, %97, %cst_55 {dimension_numbers = #tpu.dot_dimension_numbers<[1], [0], [0], [1], [0, 0, 1, 1], [], []>} : vector<32x192xf32>, vector<192x64xf32>, vector<32x64xf32> -> vector<32x64xf32>
    %c0_56 = arith.constant 0 : index
    %c0_57 = arith.constant 0 : index
    %99 = vector.load %arg1[%c0_56, %c0_57] : memref<32x64xf32, #tpu.memory_space<vmem>>, vector<32x64xf32>
    %100 = arith.addf %98, %99 : vector<32x64xf32>
    %c0_58 = arith.constant 0 : index
    %c0_59 = arith.constant 0 : index
    %101 = vector.load %arg14[%c0_58, %c0_59] : memref<32x64xf32, #tpu.memory_space<vmem>>, vector<32x64xf32>
    tpu.vector_store %arg14[%c0_58, %c0_59], %100 {strides = array<i32>} : memref<32x64xf32, #tpu.memory_space<vmem>>, vector<32x64xf32>,
    return
  }
  func.func @transform_0(%arg0: i32) -> (i32, i32) {
    %c0_i32 = arith.constant 0 : i32
    %c0_i32_0 = arith.constant 0 : i32
    %c0_i32_1 = arith.constant 0 : i32
    return %c0_i32, %c0_i32_0 : i32, i32
  }
  func.func @transform_1(%arg0: i32) -> (i32, i32) {
    %c0_i32 = arith.constant 0 : i32
    %c0_i32_0 = arith.constant 0 : i32
    %c0_i32_1 = arith.constant 0 : i32
    return %c0_i32, %c0_i32_0 : i32, i32
  }
  func.func @transform_2(%arg0: i32) -> (i32, i32) {
    %c0_i32 = arith.constant 0 : i32
    %c0_i32_0 = arith.constant 0 : i32
    %c0_i32_1 = arith.constant 0 : i32
    return %c0_i32, %c0_i32_0 : i32, i32
  }
  func.func @transform_3(%arg0: i32) -> (i32, i32) {
    %c0_i32 = arith.constant 0 : i32
    %c0_i32_0 = arith.constant 0 : i32
    %c0_i32_1 = arith.constant 0 : i32
    return %c0_i32, %c0_i32_0 : i32, i32
  }
  func.func @transform_4(%arg0: i32) -> (i32, i32) {
    %c0_i32 = arith.constant 0 : i32
    %c0_i32_0 = arith.constant 0 : i32
    %c0_i32_1 = arith.constant 0 : i32
    return %c0_i32, %c0_i32_0 : i32, i32
  }
  func.func @transform_5(%arg0: i32) -> (i32, i32) {
    %c0_i32 = arith.constant 0 : i32
    %c0_i32_0 = arith.constant 0 : i32
    %c0_i32_1 = arith.constant 0 : i32
    return %c0_i32, %c0_i32_0 : i32, i32
  }
  func.func @transform_6(%arg0: i32) -> (i32, i32) {
    %c0_i32 = arith.constant 0 : i32
    %c0_i32_0 = arith.constant 0 : i32
    %c0_i32_1 = arith.constant 0 : i32
    return %c0_i32, %c0_i32_0 : i32, i32
  }
  func.func @transform_7(%arg0: i32) -> (i32, i32) {
    %c0_i32 = arith.constant 0 : i32
    %c0_i32_0 = arith.constant 0 : i32
    %c0_i32_1 = arith.constant 0 : i32
    return %c0_i32, %c0_i32_0 : i32, i32
  }
  func.func @transform_8(%arg0: i32) -> (i32, i32) {
    %c0_i32 = arith.constant 0 : i32
    %c0_i32_0 = arith.constant 0 : i32
    %c0_i32_1 = arith.constant 0 : i32
    return %c0_i32, %c0_i32_0 : i32, i32
  }
  func.func @transform_9(%arg0: i32) -> (i32, i32) {
    %c0_i32 = arith.constant 0 : i32
    %c0_i32_0 = arith.constant 0 : i32
    %c0_i32_1 = arith.constant 0 : i32
    return %c0_i32, %c0_i32_0 : i32, i32
  }
  func.func @transform_10(%arg0: i32) -> (i32, i32) {
    %c0_i32 = arith.constant 0 : i32
    %c0_i32_0 = arith.constant 0 : i32
    %c0_i32_1 = arith.constant 0 : i32
    return %c0_i32, %c0_i32_0 : i32, i32
  }
  func.func @transform_11(%arg0: i32) -> (i32, i32) {
    %c0_i32 = arith.constant 0 : i32
    %c0_i32_0 = arith.constant 0 : i32
    %c0_i32_1 = arith.constant 0 : i32
    return %c0_i32, %c0_i32_0 : i32, i32
  }
  func.func @transform_12(%arg0: i32) -> (i32, i32) {
    %c0_i32 = arith.constant 0 : i32
    %c0_i32_0 = arith.constant 0 : i32
    %c0_i32_1 = arith.constant 0 : i32
    return %c0_i32, %c0_i32_0 : i32, i32
  }
  func.func @transform_13(%arg0: i32) -> (i32, i32) {
    %c0_i32 = arith.constant 0 : i32
    %c0_i32_0 = arith.constant 0 : i32
    %c0_i32_1 = arith.constant 0 : i32
    return %c0_i32, %c0_i32_0 : i32, i32
  }
}

</mosaic_0001>

<bundles_post_ra>
// kernel: tpu_custom_call.1
= control target key start
LH: loop header
LB: loop body
LE: loop exit
PB: predicated region body
PF: predicated region fallthrough
CT: control target
= control target key end

     0   :  { %vm65_vm0 = vcmask 523264   ;;  %s2128_s0 = inlined_call_operand.vmem [shape: f32[32,64], index: 0, kind: input, shape index: {}]   ;;  %s2129_s1 = inlined_call_operand.vmem [shape: f32[32,1], index: 1, kind: input, shape index: {}]   ;;  %s2130_s2 = inlined_call_operand.vmem [shape: f32[32,1], index: 2, kind: input, shape index: {}]   ;;  %s2131_s3 = inlined_call_operand.vmem [shape: f32[1,4], index: 3, kind: input, shape index: {}]   ;;  %s2132_s4 = inlined_call_operand.vmem [shape: f32[1,4], index: 4, kind: input, shape index: {}]   ;;  %s2133_s5 = inlined_call_operand.vmem [shape: f32[64,4], index: 5, kind: input, shape index: {}]   ;;  %s2134_s6 = inlined_call_operand.vmem [shape: f32[4,64], index: 6, kind: input, shape index: {}]   ;;  %s2135_s7 = inlined_call_operand.vmem [shape: f32[192,64], index: 7, kind: input, shape index: {}]   ;;  %s2136_s8 = inlined_call_operand.vmem [shape: f32[1,4], index: 8, kind: input, shape index: {}]   ;;  %s2137_s9 = inlined_call_operand.vmem [shape: f32[1,4], index: 9, kind: input, shape index: {}]   ;;  %s2138_s10 = inlined_call_operand.vmem [shape: f32[64,4], index: 10, kind: input, shape index: {}]   ;;  %s2139_s11 = inlined_call_operand.vmem [shape: f32[4,64], index: 11, kind: input, shape index: {}]   ;;  %s2140_s12 = inlined_call_operand.vmem [shape: f32[192,64], index: 12, kind: input, shape index: {}]   ;;  %s2141_s13 = inlined_call_operand.hbm [shape: f32[32,64], index: 13, kind: output, shape index: {}]  }
   0x1   :  { %v64_v0 = vld [vmem:[%s2133_s5 + $0x38] sm:$0xff]  ;;  %v63_v1 = vld [vmem:[%s2133_s5 + $0x30] sm:$0xff]  ;;  %v62_v2 = vld [vmem:[%s2133_s5 + $0x28] sm:$0xff] }
   0x2   :  { %1384 = vmatprep.subr.mxu0 %v64_v0  ;;  %v1620_v3 = vld [vmem:[%s2128_s0] sm:$0xff] }
   0x3   :  { %1385 = vmatpush3.msra.mxu0 %v64_v0  ;;  %1400 = vmatprep.mubr.msk.f32.mxu0 %vm65_vm0, %v1620_v3  ;;  %v61_v4 = vld [vmem:[%s2133_s5 + $0x20] sm:$0xff] }
   0x4   :  { %1386 = vmatprep.subr.mxu0 %v63_v1 }
   0x5   :  { %1387 = vmatpush3.msra.mxu0 %v63_v1 }
   0x6   :  { %18 = vsyncpa [#allocation3], 0  ;;  %1388 = vmatprep.subr.mxu0 %v62_v2  ;;  %v60_v5 = vld [vmem:[%s2133_s5 + $0x18] sm:$0xff]  ;;  %v59_v6 = vld [vmem:[%s2133_s5 + $0x10] sm:$0xff]  ;;  %v163_v12 = vmul.f32 %v1620_v3, %v1620_v3  ;;  %vm310_vm1 = vcmask 1043456   ;;  %v1531_v17 = vmov 0.0  }
   0x7   :  { %1389 = vmatpush3.msra.mxu0 %v62_v2  ;;  %v58_v7 = vld [vmem:[%s2133_s5 + $0x8] sm:$0xff]  ;;  %v57_v8 = vld [vmem:[%s2133_s5] sm:$0xff]  ;;  %v1647_v10 = vld [vmem:[%s2128_s0 + $0x10] sm:$0xff]  ;;  %vm1532_vm2 = vmmov 0   ;;  %v1533_v20 = vmov 0   ;;  %vm264_vm3 = vcmask 31744  }
   0x8   :  { %1390 = vmatprep.subr.mxu0 %v61_v4  ;;  %v1642_v9 = vld [vmem:[%s2128_s0 + $0x8] sm:$0xff]  ;;  %v1656_v11 = vld [vmem:[%s2128_s0 + $0x18] sm:$0xff]  ;;  %v165_v14 = vmul.f32 %v1647_v10, %v1647_v10  ;;  %v1675_v16 = vld [vmem:[%s2134_s6] sm:$0xf]  ;;  %1500 = vset.pattern.permute.xlu1 %v1533_v20  ;;  %s1535_s16 = smov [#allocation2]  }
   0x9   :  { %1391 = vmatpush3.msra.mxu0 %v61_v4  ;;  %v164_v13 = vmul.f32 %v1642_v9, %v1642_v9  ;;  %v166_v15 = vmul.f32 %v1656_v11, %v1656_v11  ;;  %v46_v18 = vld [vmem:[%s2129_s1 + $0x8] sm:$0xff]  ;;  %v45_v19 = vld [vmem:[%s2129_s1] sm:$0xff]  ;;  %1499 = vset.pattern.permute.xlu0 %v1533_v20  ;;  %v47_v23 = vld [vmem:[%s2129_s1 + $0x10] sm:$0xff]  ;;  %s1285_s17 = sshll.u32 %s1535_s16, 4  ;;  %s1286_s17 = int_to_ptr.vmem [resolvable:$true] %s1285_s17 }
   0xa   :  { %1392 = vmatprep.subr.mxu0 %v60_v5  ;;  %499 = vperm.xlu1 %1500, %v46_v18   ;;  %v50_v21 = vld [vmem:[%s2130_s2 + $0x8] sm:$0xff]  ;;  %v49_v22 = vld [vmem:[%s2130_s2] sm:$0xff]  ;;  %v51_v24 = vld [vmem:[%s2130_s2 + $0x10] sm:$0xff]  ;;  %p1514_p1 = scmp.lt.s32.totalorder %s1286_s17, %s1286_s17 }
   0xb   :  { %1393 = vmatpush3.msra.mxu0 %v60_v5  ;;  %494 = vperm.xlu0 %1499, %v45_v19   ;;  %v583_v18 = vld [vmem:[%s2135_s7 + $0x70] sm:$0xff]  ;;  %v581_v19 = vld [vmem:[%s2135_s7 + $0x60] sm:$0xff]  ;;  %v580_v20 = vld [vmem:[%s2135_s7 + $0x58] sm:$0xff] }
   0xc   :  { %1394 = vmatprep.subr.mxu0 %v59_v6 }
   0xd   :  { %1395 = vmatpush3.msra.mxu0 %v59_v6 }
   0xe   :  { %1396 = vmatprep.subr.mxu0 %v58_v7  ;;  %532 = vperm.xlu1 %1500, %v50_v21   ;;  %v579_v21 = vld [vmem:[%s2135_s7 + $0x50] sm:$0xff] }
   0xf   :  { %1397 = vmatpush3.msra.mxu0 %v58_v7  ;;  %527 = vperm.xlu0 %1499, %v49_v22   ;;  %v578_v22 = vld [vmem:[%s2135_s7 + $0x48] sm:$0xff] }
  0x10   :  { %1398 = vmatprep.subr.mxu0 %v57_v8 }
  0x11   :  { %1399 = vmatpush3.msra.mxu0 %v57_v8 }
  0x12   :  { %1401 = vmatmul.mubr.msk.f32.vlgmr.msra.gmra.mxu0 %vm65_vm0, %v1642_v9  ;;  %1406 = vmatprep.subr.mxu0 %v64_v0 }
  0x13   :  { %1407 = vmatpush3.msra.mxu0 %v64_v0  ;;  %1403 = vmatprep.mubr.msk.f32.mxu0 %vm65_vm0, %v1647_v10  ;;  %v303_v0 = vlaneseq }
  0x14   :  { %1408 = vmatprep.subr.mxu0 %v63_v1  ;;  %504 = vperm.xlu1 %1500, %v47_v23   ;;  %v577_v23 = vld [vmem:[%s2135_s7 + $0x40] sm:$0xff] }
  0x15   :  { %1409 = vmatpush3.msra.mxu0 %v63_v1  ;;  %537 = vperm.xlu0 %1499, %v51_v24   ;;  %v1709_v1 = vshrl.u32 %v303_v0, 7  ;;  %v576_v24 = vld [vmem:[%s2135_s7 + $0x38] sm:$0xff] }
  0x16   :  { %1404 = vmatmul.mubr.msk.f32.gmra.mxu0 %vm65_vm0, %v1656_v11  ;;  %1410 = vmatprep.subr.mxu0 %v62_v2 }
  0x17   :  { %1411 = vmatpush3.msra.mxu0 %v62_v2  ;;  %1422 = vmatprep.mubr.msk.f32.mxu0 %vm65_vm0, %v163_v12  ;;  %v295_v2 = vld [vmem:[%s2131_s3] sm:$0x1]  ;;  %vm487_vm4 = vcmp.lt.s32.totalorder %v1709_v1, 1  ;;  %vm520_vm5 = vcmp.lt.s32.totalorder %v1709_v1, 7 }
  0x18   :  { %1412 = vmatprep.subr.mxu0 %v61_v4 }
  0x19   :  { %1413 = vmatpush3.msra.mxu0 %v61_v4  ;;  %v1715_v4 = vsub.s32 0, %v1709_v1 }
  0x1a   :  { %1414 = vmatprep.subr.mxu0 %v60_v5 }
  0x1b   :  { %1415 = vmatpush3.msra.mxu0 %v60_v5 }
  0x1c   :  { %1416 = vmatprep.subr.mxu0 %v59_v6 }
  0x1d   :  { %1417 = vmatpush3.msra.mxu0 %v59_v6 }
  0x1e   :  { %1418 = vmatprep.subr.mxu0 %v58_v7 }
  0x1f   :  { %1419 = vmatpush3.msra.mxu0 %v58_v7  ;;  %v299_v7 = vld [vmem:[%s2132_s4] sm:$0x1] }
  0x20   :  { %1420 = vmatprep.subr.mxu0 %v57_v8 }
  0x21   :  { %1421 = vmatpush3.msra.mxu0 %v57_v8 }
  0x22   :  { %1423 = vmatmul.mubr.msk.f32.vlgmr.msra.gmra.mxu0 %vm65_vm0, %v164_v13  ;;  %1428 = vmatprep.subr.mxu0 %v1531_v17 }
  0x23   :  { %1425 = vmatprep.mubr.msk.f32.mxu0 %vm65_vm0, %v165_v14  ;;  %1429 = vmatpush3.msk.msra.mxu0 %vm310_vm1, %v1675_v16 }
  0x24   :  { %1433 = vmatprep.subr.mxu0 %v1531_v17 }
  0x26   :  { %1426 = vmatmul.mubr.msk.f32.gmra.mxu0 %vm65_vm0, %v166_v15  ;;  %v584_v15 = vld [vmem:[%s2135_s7 + $0x78] sm:$0xff] }
  0x27   :  { %1430 = vmatprep.mubr.msk.f32.mxu0 %vm1532_vm2, %v1531_v17 }
  0xd2   :  { %v1402_v25 = vpop.f32.mrf.mxu0 }
  0xd3   :  { %v266_v27 = vsel %vm264_vm3, %v1402_v25, 0.0  ;;  %v575_v25 = vld [vmem:[%s2135_s7 + $0x30] sm:$0xff] }
  0xd4   :  { %v144_v26 = vpop.f32.mrf.mxu0 }
  0xd5   :  { %v265_v28 = vsel %vm264_vm3, %v144_v26, 0.0  ;;  %v574_v26 = vld [vmem:[%s2135_s7 + $0x28] sm:$0xff] }
  0xd6   :  { %v1405_v29 = vpop.f32.mrf.mxu0  ;;  %v267_v30 = vadd.f32 %v266_v27, %v265_v28  ;;  %v573_v27 = vld [vmem:[%s2135_s7 + $0x20] sm:$0xff]  ;;  %v572_v28 = vld [vmem:[%s2135_s7 + $0x18] sm:$0xff] }
  0xd7   :  { %v270_v32 = vsel %vm264_vm3, %v1405_v29, 0.0  ;;  %v571_v29 = vld [vmem:[%s2135_s7 + $0x10] sm:$0xff] }
  0xd8   :  { %v154_v31 = vpop.f32.mrf.mxu0 }
  0xd9   :  { %v268_v33 = vsel %vm264_vm3, %v154_v31, 0.0  ;;  %v569_v31 = vld [vmem:[%s2135_s7] sm:$0xff] }
  0xda   :  { %v269_v34 = vadd.f32 %v268_v33, %v267_v30  ;;  %v570_v30 = vld [vmem:[%s2135_s7 + $0x8] sm:$0xff]  ;;  %v591_v33 = vld [vmem:[%s2135_s7 + $0xb0] sm:$0xff] }
  0xdc   :  { %v271_v35 = vadd.f32 %v270_v32, %v269_v34  ;;  %v592_v32 = vld [vmem:[%s2135_s7 + $0xb8] sm:$0xff]  ;;  %v590_v34 = vld [vmem:[%s2135_s7 + $0xa8] sm:$0xff] }
  0xde   :  { %v272_v36 = vrot.slane %v271_v35, 4 }
  0xe0   :  { %v273_v37 = vadd.f32 %v272_v36, %v271_v35  ;;  %v589_v35 = vld [vmem:[%s2135_s7 + $0xa0] sm:$0xff]  ;;  %v588_v36 = vld [vmem:[%s2135_s7 + $0x98] sm:$0xff] }
  0xe2   :  { %v1424_v38 = vpop.f32.mrf.mxu0  ;;  %v274_v41 = vrot.slane %v273_v37, 2 }
  0xe3   :  { %v280_v43 = vsel %vm264_vm3, %v1424_v38, 0.0  ;;  %v586_v38 = vld [vmem:[%s2135_s7 + $0x88] sm:$0xff] }
  0xe4   :  { %v245_v39 = vpop.f32.mrf.mxu0  ;;  %v275_v47 = vadd.f32 %v274_v41, %v273_v37  ;;  %v587_v37 = vld [vmem:[%s2135_s7 + $0x90] sm:$0xff] }
  0xe5   :  { %v279_v40 = vsel %vm264_vm3, %v245_v39, 0.0  ;;  %v585_v39 = vld [vmem:[%s2135_s7 + $0x80] sm:$0xff] }
  0xe6   :  { %v1427_v42 = vpop.f32.mrf.mxu0  ;;  %v281_v44 = vadd.f32 %v280_v43, %v279_v40  ;;  %v276_v51 = vrot.slane %v275_v47, 1 }
  0xe7   :  { %v284_v49 = vsel %vm264_vm3, %v1427_v42, 0.0 }
  0xe8   :  { %v255_v45 = vpop.f32.mrf.mxu0  ;;  %v277_v54 = vadd.f32 %v276_v51, %v275_v47 }
  0xe9   :  { %v282_v46 = vsel %vm264_vm3, %v255_v45, 0.0 }
  0xea   :  { %v283_v48 = vadd.f32 %v282_v46, %v281_v44  ;;  %v278_v57 = vmul.f32 0.001953125, %v277_v54  ;;  %v1830_v54 = vpop.permute.xlu0 %494 }
  0xec   :  { %v285_v50 = vadd.f32 %v284_v49, %v283_v48  ;;  %v293_v60 = vmul.f32 %v278_v57, %v278_v57 }
  0xee   :  { %v286_v52 = vrot.slane %v285_v50, 4 }
  0xf0   :  { %v287_v53 = vadd.f32 %v286_v52, %v285_v50 }
  0xf2   :  { %v288_v55 = vrot.slane %v287_v53, 2 }
  0xf4   :  { %v289_v56 = vadd.f32 %v288_v55, %v287_v53 }
  0xf6   :  { %v290_v58 = vrot.slane %v289_v56, 1 }
  0xf8   :  { %v291_v59 = vadd.f32 %v290_v58, %v289_v56 }
  0xfa   :  { %v292_v61 = vmul.f32 0.001953125, %v291_v59 }
  0xfc   :  { %v294_v62 = vsub.f32 %v292_v61, %v293_v60 }
  0xfe   :  { %v296_v63 = vadd.f32 1e-05, %v294_v62 }
 0x100   :  { %1501 = vrsqrt.f32 %v296_v63  ;;  %v52_v63 = vld [vmem:[%s2130_s2 + $0x18] sm:$0xff] }
 0x10d   :  { %v1502_v5 = vpop.eup %1501 }
 0x10e   :  { %v298_v6 = vmul.f32 %v1502_v5, %v295_v2  ;;  %v48_v5 = vld [vmem:[%s2129_s1 + $0x18] sm:$0xff] }
 0x110   :  { %v306_v8 = vrot.slane %v298_v6, %v1715_v4  ;;  %v300_v12 = vmul.f32 %v298_v6, %v278_v57 }
 0x112   :  { %1431 = vmatmul.mubr.msk.f32.vlgmr.msra.gmra.mxu0 %vm264_vm3, %v306_v8  ;;  %v301_v13 = vsub.f32 %v299_v7, %v300_v12  ;;  %v1850_v8 = vpop.permute.xlu0 %527 }
 0x113   :  { %1434 = vmatpush3.msk.msra.mxu0 %vm310_vm1, %v1675_v16  ;;  %1435 = vmatprep.mubr.msk.f32.mxu0 %vm1532_vm2, %v1531_v17  ;;  %v582_v16 = vld [vmem:[%s2135_s7 + $0x68] sm:$0xff]  ;;  %s1534_s7 = smov 64  }
 0x114   :  { %v388_v14 = vrot.slane %v301_v13, %v1715_v4  ;;  %605 = vmatprep.subr.mxu0 %v1531_v17 }
 0x116   :  { %1436 = vmatmul.mubr.msk.f32.vlgmr.msra.gmra.mxu0 %vm264_vm3, %v388_v14 }
 0x117   :  { %606 = vmatpush1.msra.mxu0 %v584_v15 }
 0x118   :  { %607 = vmatprep.subr.mxu0 %v1531_v17 }
 0x119   :  { %608 = vmatpush1.msra.mxu0 %v583_v18 }
 0x11a   :  { %609 = vmatprep.subr.mxu0 %v1531_v17 }
 0x11b   :  { %610 = vmatpush1.msra.mxu0 %v582_v16  ;;  %v697_v16 = vld [vmem:[%s2138_s10 + $0x38] sm:$0xff] }
 0x11c   :  { %611 = vmatprep.subr.mxu0 %v1531_v17  ;;  %1438 = vmatprep.subr.mxu1 %v697_v16 }
 0x11d   :  { %612 = vmatpush1.msra.mxu0 %v581_v19  ;;  %v696_v19 = vld [vmem:[%s2138_s10 + $0x30] sm:$0xff]  ;;  %1439 = vmatpush3.msra.mxu1 %v697_v16 }
 0x11e   :  { %613 = vmatprep.subr.mxu0 %v1531_v17  ;;  %1440 = vmatprep.subr.mxu1 %v696_v19 }
 0x11f   :  { %614 = vmatpush1.msra.mxu0 %v580_v20  ;;  %v695_v20 = vld [vmem:[%s2138_s10 + $0x28] sm:$0xff]  ;;  %1441 = vmatpush3.msra.mxu1 %v696_v19 }
 0x120   :  { %615 = vmatprep.subr.mxu0 %v1531_v17  ;;  %1442 = vmatprep.subr.mxu1 %v695_v20 }
 0x121   :  { %616 = vmatpush1.msra.mxu0 %v579_v21  ;;  %v694_v21 = vld [vmem:[%s2138_s10 + $0x20] sm:$0xff]  ;;  %1443 = vmatpush3.msra.mxu1 %v695_v20 }
 0x122   :  { %617 = vmatprep.subr.mxu0 %v1531_v17  ;;  %1444 = vmatprep.subr.mxu1 %v694_v21 }
 0x123   :  { %618 = vmatpush1.msra.mxu0 %v578_v22  ;;  %v693_v22 = vld [vmem:[%s2138_s10 + $0x18] sm:$0xff]  ;;  %1445 = vmatpush3.msra.mxu1 %v694_v21 }
 0x124   :  { %619 = vmatprep.subr.mxu0 %v1531_v17  ;;  %1446 = vmatprep.subr.mxu1 %v693_v22 }
 0x125   :  { %620 = vmatpush1.msra.mxu0 %v577_v23  ;;  %v692_v23 = vld [vmem:[%s2138_s10 + $0x10] sm:$0xff]  ;;  %1447 = vmatpush3.msra.mxu1 %v693_v22 }
 0x126   :  { %621 = vmatprep.subr.mxu0 %v1531_v17  ;;  %1448 = vmatprep.subr.mxu1 %v692_v23 }
 0x127   :  { %622 = vmatpush1.msra.mxu0 %v576_v24  ;;  %1449 = vmatpush3.msra.mxu1 %v692_v23  ;;  %v1882_v24 = vpop.permute.xlu1 %499 }
 0x128   :  { %623 = vmatprep.subr.mxu0 %v1531_v17 }
 0x129   :  { %624 = vmatpush1.msra.mxu0 %v575_v25 }
 0x12a   :  { %625 = vmatprep.subr.mxu0 %v1531_v17 }
 0x12b   :  { %626 = vmatpush1.msra.mxu0 %v574_v26  ;;  %v1884_v25 = vpop.permute.xlu1 %532  ;;  %v1886_v26 = vpop.permute.xlu0 %537 }
 0x12c   :  { %627 = vmatprep.subr.mxu0 %v1531_v17 }
 0x12d   :  { %628 = vmatpush1.msra.mxu0 %v573_v27 }
 0x12e   :  { %629 = vmatprep.subr.mxu0 %v1531_v17 }
 0x12f   :  { %630 = vmatpush1.msra.mxu0 %v572_v28  ;;  %v1888_v27 = vpop.permute.xlu1 %504 }
 0x130   :  { %631 = vmatprep.subr.mxu0 %v1531_v17 }
 0x131   :  { %632 = vmatpush1.msra.mxu0 %v571_v29 }
 0x132   :  { %633 = vmatprep.subr.mxu0 %v1531_v17 }
 0x133   :  { %634 = vmatpush1.msra.mxu0 %v570_v30 }
 0x134   :  { %635 = vmatprep.subr.mxu0 %v1531_v17 }
 0x135   :  { %636 = vmatpush1.msra.mxu0 %v569_v31 }
 0x136   :  { %653 = vmatprep.subr.mxu0 %v1531_v17 }
 0x137   :  { %654 = vmatpush2.msra.mxu0 %v592_v32 }
 0x138   :  { %655 = vmatprep.subr.mxu0 %v1531_v17 }
 0x139   :  { %656 = vmatpush2.msra.mxu0 %v591_v33 }
 0x13a   :  { %657 = vmatprep.subr.mxu0 %v1531_v17 }
 0x13b   :  { %658 = vmatpush2.msra.mxu0 %v590_v34 }
 0x13c   :  { %659 = vmatprep.subr.mxu0 %v1531_v17 }
 0x13d   :  { %660 = vmatpush2.msra.mxu0 %v589_v35 }
 0x13e   :  { %661 = vmatprep.subr.mxu0 %v1531_v17 }
 0x13f   :  { %662 = vmatpush2.msra.mxu0 %v588_v36 }
 0x140   :  { %663 = vmatprep.subr.mxu0 %v1531_v17 }
 0x141   :  { %664 = vmatpush2.msra.mxu0 %v587_v37 }
 0x142   :  { %665 = vmatprep.subr.mxu0 %v1531_v17 }
 0x143   :  { %666 = vmatpush2.msra.mxu0 %v586_v38 }
 0x144   :  { %667 = vmatprep.subr.mxu0 %v1531_v17 }
 0x145   :  { %668 = vmatpush2.msra.mxu0 %v585_v39 }
 0x1d2   :  { %v380_v40 = vpop.f32.mrf.mxu0 }
 0x1d3   :  { %v464_v41 = vrot.slane %v380_v40, %v1715_v4 }
 0x1d4   :  { %v1432_v42 = vpop.f32.mrf.mxu0 }
 0x1d5   :  { %v465_v43 = vmul.f32 %v464_v41, %v1620_v3  ;;  %v466_v45 = vmul.f32 %v464_v41, %v1642_v9  ;;  %v467_v46 = vmul.f32 %v464_v41, %v1647_v10  ;;  %v468_v47 = vmul.f32 %v464_v41, %v1656_v11 }
 0x1d6   :  { %v457_v44 = vpop.f32.mrf.mxu0 }
 0x1d7   :  { %v472_v48 = vrot.slane %v457_v44, %v1715_v4 }
 0x1d8   :  { %v1437_v49 = vpop.f32.mrf.mxu0 }
 0x1d9   :  { %v473_v50 = vadd.f32 %v472_v48, %v465_v43  ;;  %v474_v51 = vadd.f32 %v472_v48, %v466_v45  ;;  %v475_v52 = vadd.f32 %v472_v48, %v467_v46  ;;  %v476_v53 = vadd.f32 %v472_v48, %v468_v47  ;;  %v691_v45 = vld [vmem:[%s2138_s10 + $0x8] sm:$0xff]  ;;  %v690_v46 = vld [vmem:[%s2138_s10] sm:$0xff] }
 0x1da   :  { %1450 = vmatprep.subr.mxu1 %v691_v45 }
 0x1db   :  { %v477_v55 = vmax.f32 %v473_v50, 0.0  ;;  %v478_v56 = vmax.f32 %v474_v51, 0.0  ;;  %v479_v57 = vmax.f32 %v475_v52, 0.0  ;;  %v480_v3 = vmax.f32 %v476_v53, 0.0  ;;  %1451 = vmatpush3.msra.mxu1 %v691_v45 }
 0x1dc   :  { %1452 = vmatprep.subr.mxu1 %v690_v46 }
 0x1dd   :  { %v481_v9 = vrot.slane %v477_v55, 7  ;;  %v482_v10 = vrot.slane %v478_v56, 7  ;;  %v484_v11 = vrot.slane %v480_v3, 7  ;;  %v517_v58 = vrot.slane %v478_v56, 1  ;;  %555 = vrot.lane.b32.xlu1 %v478_v56, %s1534_s7  ;;  %553 = vrot.lane.b32.xlu0 %v477_v55, %s1534_s7 }
 0x1de   :  { %v518_v59 = vrot.slane %v479_v57, 1  ;;  %v516_v60 = vrot.slane %v477_v55, 1  ;;  %v483_v61 = vrot.slane %v479_v57, 7  ;;  %v519_v62 = vrot.slane %v480_v3, 1  ;;  %1453 = vmatpush3.msra.mxu1 %v690_v46 }
 0x1df   :  { %v490_v0 = vsel %vm487_vm4, %v481_v9, %v482_v10  ;;  %v491_v2 = vsel %vm487_vm4, %v484_v11, %v481_v9  ;;  %1460 = vmatprep.subr.mxu1 %v697_v16 }
 0x1e0   :  { %v522_v6 = vsel %vm520_vm5, %v517_v58, %v518_v59  ;;  %v523_v7 = vsel %vm520_vm5, %v516_v60, %v517_v58  ;;  %v489_v13 = vsel %vm487_vm4, %v482_v10, %v483_v61  ;;  %v521_v14 = vsel %vm520_vm5, %v518_v59, %v519_v62  ;;  %v938_v10 = vld [vmem:[%s2139_s11] sm:$0xf] }
 0x1e1   :  { %v545_v12 = vmul.f32 %v1850_v8, %v523_v7  ;;  %542 = vperm.xlu1 %1500, %v52_v63   ;;  %509 = vperm.xlu0 %1499, %v48_v5   ;;  %v524_v15 = vsel %vm520_vm5, %v519_v62, %v516_v60  ;;  %v488_v18 = vsel %vm487_vm4, %v483_v61, %v484_v11 }
 0x1e2   :  { %v512_v28 = vmul.f32 %v1830_v54, %v491_v2  ;;  %v546_v30 = vmul.f32 %v1884_v25, %v522_v6  ;;  %v513_v33 = vmul.f32 %v1882_v24, %v490_v0  ;;  %v547_v34 = vmul.f32 %v1886_v26, %v521_v14 }
 0x1e3   :  { %1308 = vmatprep.mubr.msk.f32.mxu0 %vm65_vm0, %v545_v12  ;;  %v514_v38 = vmul.f32 %v1888_v27, %v489_v13 }
 0x1e5   :  { %559 = vrot.lane.b32.xlu1 %v480_v3, %s1534_s7  ;;  %557 = vrot.lane.b32.xlu0 %v479_v57, %s1534_s7 }
 0x24f   :  { %v554_v29 = vpop.permute.xlu0 %553  ;;  %v556_v32 = vpop.permute.xlu1 %555 }
 0x250   :  { %v565_v31 = vsel %vm65_vm0, %v512_v28, %v554_v29  ;;  %v566_v35 = vsel %vm65_vm0, %v513_v33, %v556_v32 }
 0x251   :  { %670 = vmatmul.mubr.f32.vlgmr.msra.gmra.mxu0 %v565_v31 }
 0x252   :  { %1309 = vmatprep.mubr.msk.f32.mxu0 %vm65_vm0, %v546_v30 }
 0x255   :  { %675 = vmatmul.mubr.f32.gmra.mxu0 %v566_v35 }
 0x256   :  { %1310 = vmatprep.mubr.msk.f32.mxu0 %vm65_vm0, %v547_v34 }
 0x25c   :  { %v1898_v36 = vpop.permute.xlu1 %542  ;;  %v1900_v37 = vpop.permute.xlu0 %509 }
 0x25d   :  { %v548_v40 = vmul.f32 %v1898_v36, %v524_v15  ;;  %v515_v43 = vmul.f32 %v1900_v37, %v488_v18 }
 0x260   :  { %v558_v39 = vpop.permute.xlu0 %557  ;;  %v560_v42 = vpop.permute.xlu1 %559 }
 0x261   :  { %v567_v41 = vsel %vm65_vm0, %v514_v38, %v558_v39  ;;  %v568_v44 = vsel %vm65_vm0, %v515_v43, %v560_v42 }
 0x262   :  { %680 = vmatmul.mubr.f32.gmra.mxu0 %v567_v41 }
 0x263   :  { %1311 = vmatprep.mubr.msk.f32.mxu0 %vm65_vm0, %v548_v40 }
 0x266   :  { %685 = vmatmul.mubr.f32.gmra.mxu0 %v568_v44 }
 0x311   :  { %v1914_v47 = vpop.f32.mrf.mxu0 }
 0x312   :  { %1454 = vmatprep.mubr.msk.f32.mxu1 %vm65_vm0, %v1914_v47  ;;  %v795_v53 = vmul.f32 %v1914_v47, %v1914_v47 }
 0x313   :  { %v673_v48 = vpop.f32.mrf.mxu0 }
 0x315   :  { %v1918_v49 = vpop.f32.mrf.mxu0 }
 0x316   :  { %1455 = vmatmul.mubr.msk.f32.vlgmr.msra.gmra.mxu1 %vm65_vm0, %v1918_v49  ;;  %v796_v57 = vmul.f32 %v1918_v49, %v1918_v49 }
 0x317   :  { %v678_v50 = vpop.f32.mrf.mxu0  ;;  %1461 = vmatpush3.msra.mxu1 %v697_v16 }
 0x318   :  { %1462 = vmatprep.subr.mxu1 %v696_v19 }
 0x319   :  { %1463 = vmatpush3.msra.mxu1 %v696_v19 }
 0x31a   :  { %1464 = vmatprep.subr.mxu1 %v695_v20 }
 0x31b   :  { %1465 = vmatpush3.msra.mxu1 %v695_v20 }
 0x31c   :  { %1466 = vmatprep.subr.mxu1 %v694_v21 }
 0x31d   :  { %1467 = vmatpush3.msra.mxu1 %v694_v21 }
 0x31e   :  { %1468 = vmatprep.subr.mxu1 %v693_v22 }
 0x31f   :  { %1469 = vmatpush3.msra.mxu1 %v693_v22 }
 0x320   :  { %1470 = vmatprep.subr.mxu1 %v692_v23 }
 0x321   :  { %1471 = vmatpush3.msra.mxu1 %v692_v23 }
 0x322   :  { %1472 = vmatprep.subr.mxu1 %v691_v45  ;;  %v1922_v51 = vpop.f32.mrf.mxu0 }
 0x323   :  { %1473 = vmatpush3.msra.mxu1 %v691_v45  ;;  %1457 = vmatprep.mubr.msk.f32.mxu1 %vm65_vm0, %v1922_v51  ;;  %v797_v3 = vmul.f32 %v1922_v51, %v1922_v51 }
 0x324   :  { %1474 = vmatprep.subr.mxu1 %v690_v46  ;;  %v683_v52 = vpop.f32.mrf.mxu0 }
 0x325   :  { %1475 = vmatpush3.msra.mxu1 %v690_v46  ;;  %v926_v46 = vld [vmem:[%s2136_s8] sm:$0x1] }
 0x326   :  { %1482 = vmatprep.subr.mxu1 %v1531_v17  ;;  %v1929_v55 = vpop.f32.mrf.mxu0  ;;  %v930_v52 = vld [vmem:[%s2137_s9] sm:$0x1]  ;;  %s1509_s9 = scalar_lea.vmem %s1286_s17, 512 }
 0x327   :  { %1458 = vmatmul.mubr.msk.f32.gmra.mxu1 %vm65_vm0, %v1929_v55  ;;  %v798_v9 = vmul.f32 %v1929_v55, %v1929_v55  ;;  %p1510_p0 = scmp.ne.s32.totalorder %s1286_s17, %s1509_s9  ;;  %p1515_p2 = scmp.lt.s32.totalorder %s1509_s9, %s1509_s9 }
 0x328   :  { %v688_v56 = vpop.f32.mrf.mxu0  ;;  %1476 = vmatprep.mubr.msk.f32.mxu1 %vm65_vm0, %v795_v53 }
 0x329   :  { %p1516_p3 = por %p1515_p2, %p1514_p1 }
 0x32b   :  { %1477 = vmatmul.mubr.msk.f32.vlgmr.msra.gmra.mxu1 %vm65_vm0, %v796_v57  ;;  %p1517_p4 = pnand %p1516_p3, %p1510_p0 }
 0x32c   :  { %1479 = vmatprep.mubr.msk.f32.mxu1 %vm65_vm0, %v797_v3  ;;  %1483 = vmatpush3.msk.msra.mxu1 %vm310_vm1, %v938_v10 }
 0x32d   :  { %1487 = vmatprep.subr.mxu1 %v1531_v17 }
 0x32f   :  { %1480 = vmatmul.mubr.msk.f32.gmra.mxu1 %vm65_vm0, %v798_v9  ;;  %v1170_v9 = vld [vmem:[%s2140_s12 + $0x78] sm:$0xff] }
 0x330   :  { %1484 = vmatprep.mubr.msk.f32.mxu1 %vm1532_vm2, %v1531_v17 }
 0x3d6   :  { %v1456_v11 = vpop.f32.mrf.mxu1 }
 0x3d7   :  { %v897_v61 = vsel %vm264_vm3, %v1456_v11, 0.0  ;;  %v1169_v11 = vld [vmem:[%s2140_s12 + $0x70] sm:$0xff] }
 0x3d8   :  { %v776_v58 = vpop.f32.mrf.mxu1 }
 0x3d9   :  { %v896_v59 = vsel %vm264_vm3, %v776_v58, 0.0  ;;  %v1167_v58 = vld [vmem:[%s2140_s12 + $0x60] sm:$0xff] }
 0x3da   :  { %v898_v62 = vadd.f32 %v897_v61, %v896_v59  ;;  %v1166_v59 = vld [vmem:[%s2140_s12 + $0x58] sm:$0xff]  ;;  %v1164_v61 = vld [vmem:[%s2140_s12 + $0x48] sm:$0xff] }
 0x3e7   :  { %v1459_v60 = vpop.f32.mrf.mxu1 }
 0x3e8   :  { %v901_v6 = vsel %vm264_vm3, %v1459_v60, 0.0  ;;  %v1165_v60 = vld [vmem:[%s2140_s12 + $0x50] sm:$0xff] }
 0x3e9   :  { %v786_v63 = vpop.f32.mrf.mxu1 }
 0x3ea   :  { %v899_v0 = vsel %vm264_vm3, %v786_v63, 0.0  ;;  %v1162_v63 = vld [vmem:[%s2140_s12 + $0x38] sm:$0xff] }
 0x3eb   :  { %v900_v2 = vadd.f32 %v899_v0, %v898_v62  ;;  %v1478_v5 = vpop.f32.mrf.mxu1  ;;  %v1163_v62 = vld [vmem:[%s2140_s12 + $0x40] sm:$0xff]  ;;  %v1161_v0 = vld [vmem:[%s2140_s12 + $0x30] sm:$0xff] }
 0x3ec   :  { %v911_v18 = vsel %vm264_vm3, %v1478_v5, 0.0  ;;  %v1159_v5 = vld [vmem:[%s2140_s12 + $0x20] sm:$0xff] }
 0x3ed   :  { %v902_v7 = vadd.f32 %v901_v6, %v900_v2  ;;  %v877_v12 = vpop.f32.mrf.mxu1  ;;  %v1160_v2 = vld [vmem:[%s2140_s12 + $0x28] sm:$0xff]  ;;  %v1158_v6 = vld [vmem:[%s2140_s12 + $0x18] sm:$0xff] }
 0x3ee   :  { %v910_v13 = vsel %vm264_vm3, %v877_v12, 0.0  ;;  %v1156_v12 = vld [vmem:[%s2140_s12 + $0x8] sm:$0xff] }
 0x3ef   :  { %v903_v14 = vrot.slane %v902_v7, 4  ;;  %v1481_v15 = vpop.f32.mrf.mxu1  ;;  %v912_v19 = vadd.f32 %v911_v18, %v910_v13  ;;  %v1155_v13 = vld [vmem:[%s2140_s12] sm:$0xff]  ;;  %v1176_v18 = vld [vmem:[%s2140_s12 + $0xa8] sm:$0xff] }
 0x3f0   :  { %v915_v28 = vsel %vm264_vm3, %v1481_v15, 0.0  ;;  %v1177_v15 = vld [vmem:[%s2140_s12 + $0xb0] sm:$0xff] }
 0x3f1   :  { %v904_v16 = vadd.f32 %v903_v14, %v902_v7  ;;  %v887_v20 = vpop.f32.mrf.mxu1  ;;  %v1157_v7 = vld [vmem:[%s2140_s12 + $0x10] sm:$0xff]  ;;  %v1178_v14 = vld [vmem:[%s2140_s12 + $0xb8] sm:$0xff] }
 0x3f2   :  { %v913_v21 = vsel %vm264_vm3, %v887_v20, 0.0  ;;  %v1173_v20 = vld [vmem:[%s2140_s12 + $0x90] sm:$0xff] }
 0x3f3   :  { %v905_v22 = vrot.slane %v904_v16, 2  ;;  %v914_v23 = vadd.f32 %v913_v21, %v912_v19  ;;  %v1174_v19 = vld [vmem:[%s2140_s12 + $0x98] sm:$0xff]  ;;  %v1172_v21 = vld [vmem:[%s2140_s12 + $0x88] sm:$0xff] }
 0x3f5   :  { %v906_v29 = vadd.f32 %v905_v22, %v904_v16  ;;  %v916_v30 = vadd.f32 %v915_v28, %v914_v23  ;;  %v1175_v16 = vld [vmem:[%s2140_s12 + $0xa0] sm:$0xff] }
 0x3f6   :  { %v1171_v22 = vld [vmem:[%s2140_s12 + $0x80] sm:$0xff] }
 0x3f7   :  { %v907_v31 = vrot.slane %v906_v29, 1  ;;  %v917_v32 = vrot.slane %v916_v30, 4 }
 0x3f9   :  { %v918_v33 = vadd.f32 %v917_v32, %v916_v30  ;;  %v908_v34 = vadd.f32 %v907_v31, %v906_v29 }
 0x3fb   :  { %v919_v35 = vrot.slane %v918_v33, 2  ;;  %v909_v39 = vmul.f32 0.001953125, %v908_v34 }
 0x3fd   :  { %v920_v38 = vadd.f32 %v919_v35, %v918_v33  ;;  %v924_v42 = vmul.f32 %v909_v39, %v909_v39 }
 0x3ff   :  { %v921_v40 = vrot.slane %v920_v38, 1 }
 0x401   :  { %v922_v41 = vadd.f32 %v921_v40, %v920_v38 }
 0x403   :  { %v923_v43 = vmul.f32 0.001953125, %v922_v41 }
 0x405   :  { %v925_v44 = vsub.f32 %v923_v43, %v924_v42 }
 0x407   :  { %v927_v45 = vadd.f32 1e-05, %v925_v44 }
 0x409   :  { %1503 = vrsqrt.f32 %v927_v45 }
 0x416   :  { %v1504_v48 = vpop.eup %1503 }
 0x417   :  { %v929_v50 = vmul.f32 %v1504_v48, %v926_v46 }
 0x419   :  { %v937_v53 = vrot.slane %v929_v50, %v1715_v4  ;;  %v931_v56 = vmul.f32 %v929_v50, %v909_v39 }
 0x41b   :  { %1485 = vmatmul.mubr.msk.f32.vlgmr.msra.gmra.mxu1 %vm264_vm3, %v937_v53  ;;  %v932_v57 = vsub.f32 %v930_v52, %v931_v56 }
 0x41c   :  { %1488 = vmatpush3.msk.msra.mxu1 %vm310_vm1, %v938_v10  ;;  %1489 = vmatprep.mubr.msk.f32.mxu1 %vm1532_vm2, %v1531_v17  ;;  %v1168_v10 = vld [vmem:[%s2140_s12 + $0x68] sm:$0xff] }
 0x41d   :  { %v1018_v3 = vrot.slane %v932_v57, %v1715_v4  ;;  %1191 = vmatprep.subr.mxu1 %v1531_v17 }
 0x41f   :  { %1490 = vmatmul.mubr.msk.f32.vlgmr.msra.gmra.mxu1 %vm264_vm3, %v1018_v3 }
 0x420   :  { %1192 = vmatpush1.msra.mxu1 %v1170_v9 }
 0x421   :  { %1193 = vmatprep.subr.mxu1 %v1531_v17 }
 0x422   :  { %1194 = vmatpush1.msra.mxu1 %v1169_v11 }
 0x423   :  { %1195 = vmatprep.subr.mxu1 %v1531_v17 }
 0x424   :  { %1196 = vmatpush1.msra.mxu1 %v1168_v10 }
 0x425   :  { %1197 = vmatprep.subr.mxu1 %v1531_v17 }
 0x426   :  { %1198 = vmatpush1.msra.mxu1 %v1167_v58 }
 0x427   :  { %1199 = vmatprep.subr.mxu1 %v1531_v17 }
 0x428   :  { %1200 = vmatpush1.msra.mxu1 %v1166_v59 }
 0x429   :  { %1201 = vmatprep.subr.mxu1 %v1531_v17 }
 0x42a   :  { %1202 = vmatpush1.msra.mxu1 %v1165_v60 }
 0x42b   :  { %1203 = vmatprep.subr.mxu1 %v1531_v17 }
 0x42c   :  { %1204 = vmatpush1.msra.mxu1 %v1164_v61 }
 0x42d   :  { %1205 = vmatprep.subr.mxu1 %v1531_v17 }
 0x42e   :  { %1206 = vmatpush1.msra.mxu1 %v1163_v62 }
 0x42f   :  { %1207 = vmatprep.subr.mxu1 %v1531_v17 }
 0x430   :  { %1208 = vmatpush1.msra.mxu1 %v1162_v63 }
 0x431   :  { %1209 = vmatprep.subr.mxu1 %v1531_v17 }
 0x432   :  { %1210 = vmatpush1.msra.mxu1 %v1161_v0 }
 0x433   :  { %1211 = vmatprep.subr.mxu1 %v1531_v17 }
 0x434   :  { %1212 = vmatpush1.msra.mxu1 %v1160_v2 }
 0x435   :  { %1213 = vmatprep.subr.mxu1 %v1531_v17 }
 0x436   :  { %1214 = vmatpush1.msra.mxu1 %v1159_v5 }
 0x437   :  { %1215 = vmatprep.subr.mxu1 %v1531_v17 }
 0x438   :  { %1216 = vmatpush1.msra.mxu1 %v1158_v6 }
 0x439   :  { %1217 = vmatprep.subr.mxu1 %v1531_v17 }
 0x43a   :  { %1218 = vmatpush1.msra.mxu1 %v1157_v7 }
 0x43b   :  { %1219 = vmatprep.subr.mxu1 %v1531_v17 }
 0x43c   :  { %1220 = vmatpush1.msra.mxu1 %v1156_v12  ;;  %v1505_v12 = vld [vmem:[%s2128_s0] sm:$0xff] }
 0x43d   :  { %1221 = vmatprep.subr.mxu1 %v1531_v17 }
 0x43e   :  { %1222 = vmatpush1.msra.mxu1 %v1155_v13 }
 0x43f   :  { %1239 = vmatprep.subr.mxu1 %v1531_v17 }
 0x440   :  { %1240 = vmatpush2.msra.mxu1 %v1178_v14 }
 0x441   :  { %1241 = vmatprep.subr.mxu1 %v1531_v17 }
 0x442   :  { %1242 = vmatpush2.msra.mxu1 %v1177_v15 }
 0x443   :  { %1243 = vmatprep.subr.mxu1 %v1531_v17 }
 0x444   :  { %1244 = vmatpush2.msra.mxu1 %v1176_v18 }
 0x445   :  { %1245 = vmatprep.subr.mxu1 %v1531_v17 }
 0x446   :  { %1246 = vmatpush2.msra.mxu1 %v1175_v16  ;;  %v1507_v16 = vld [vmem:[%s2128_s0 + $0x10] sm:$0xff] }
 0x447   :  { %1247 = vmatprep.subr.mxu1 %v1531_v17 }
 0x448   :  { %1248 = vmatpush2.msra.mxu1 %v1174_v19 }
 0x449   :  { %1249 = vmatprep.subr.mxu1 %v1531_v17 }
 0x44a   :  { %1250 = vmatpush2.msra.mxu1 %v1173_v20 }
 0x44b   :  { %1251 = vmatprep.subr.mxu1 %v1531_v17 }
 0x44c   :  { %1252 = vmatpush2.msra.mxu1 %v1172_v21 }
 0x44d   :  { %1253 = vmatprep.subr.mxu1 %v1531_v17 }
 0x44e   :  { %1254 = vmatpush2.msra.mxu1 %v1171_v22  ;;  %v1508_v22 = vld [vmem:[%s2128_s0 + $0x18] sm:$0xff] }
 0x4db   :  { %v1010_v23 = vpop.f32.mrf.mxu1 }
 0x4dc   :  { %v1094_v28 = vrot.slane %v1010_v23, %v1715_v4 }
 0x4dd   :  { %v1486_v29 = vpop.f32.mrf.mxu1 }
 0x4de   :  { %v1096_v31 = vmul.f32 %v1094_v28, %v1918_v49  ;;  %v1095_v33 = vmul.f32 %v1094_v28, %v1914_v47  ;;  %v1098_v34 = vmul.f32 %v1094_v28, %v1929_v55  ;;  %v1097_v17 = vmul.f32 %v1094_v28, %v1922_v51 }
 0x4df   :  { %v1087_v30 = vpop.f32.mrf.mxu1 }
 0x4e0   :  { %v1102_v32 = vrot.slane %v1087_v30, %v1715_v4 }
 0x4e1   :  { %v1491_v35 = vpop.f32.mrf.mxu1 }
 0x4e2   :  { %v1104_v38 = vadd.f32 %v1102_v32, %v1096_v31  ;;  %v1103_v39 = vadd.f32 %v1102_v32, %v1095_v33  ;;  %v1106_v40 = vadd.f32 %v1102_v32, %v1098_v34  ;;  %v1105_v41 = vadd.f32 %v1102_v32, %v1097_v17 }
 0x4e4   :  { %v1108_v42 = vmax.f32 %v1104_v38, 0.0  ;;  %v1107_v43 = vmax.f32 %v1103_v39, 0.0  ;;  %v1110_v44 = vmax.f32 %v1106_v40, 0.0  ;;  %v1109_v45 = vmax.f32 %v1105_v41, 0.0 }
 0x4e6   :  { %1141 = vrot.lane.b32.xlu1 %v1108_v42, %s1534_s7  ;;  %v1112_v49 = vrot.slane %v1108_v42, 7  ;;  %v1124_v46 = vrot.slane %v1108_v42, 1  ;;  %1139 = vrot.lane.b32.xlu0 %v1107_v43, %s1534_s7  ;;  %v1111_v4 = vrot.slane %v1107_v43, 7  ;;  %v1123_v47 = vrot.slane %v1107_v43, 1 }
 0x4e7   :  { %v1114_v55 = vrot.slane %v1110_v44, 7  ;;  %v1126_v48 = vrot.slane %v1110_v44, 1  ;;  %v1113_v51 = vrot.slane %v1109_v45, 7  ;;  %v1125_v50 = vrot.slane %v1109_v45, 1 }
 0x4e8   :  { %v1129_v52 = vsel %vm520_vm5, %v1123_v47, %v1124_v46  ;;  %v1117_v53 = vsel %vm487_vm4, %v1111_v4, %v1112_v49 }
 0x4e9   :  { %v1131_v56 = vmul.f32 %v1129_v52, %v1850_v8  ;;  %v1118_v57 = vsel %vm487_vm4, %v1114_v55, %v1111_v4  ;;  %v1128_v3 = vsel %vm520_vm5, %v1124_v46, %v1125_v50  ;;  %v1127_v9 = vsel %vm520_vm5, %v1125_v50, %v1126_v48 }
 0x4ea   :  { %1145 = vrot.lane.b32.xlu1 %v1110_v44, %s1534_s7  ;;  %1143 = vrot.lane.b32.xlu0 %v1109_v45, %s1534_s7  ;;  %v1116_v11 = vsel %vm487_vm4, %v1112_v49, %v1113_v51  ;;  %v1130_v8 = vsel %vm520_vm5, %v1126_v48, %v1123_v47  ;;  %v1115_v10 = vsel %vm487_vm4, %v1113_v51, %v1114_v55 }
 0x4eb   :  { %1324 = vmatprep.mubr.msk.f32.mxu1 %vm65_vm0, %v1131_v56  ;;  %v1119_v58 = vmul.f32 %v1118_v57, %v1830_v54  ;;  %v1132_v61 = vmul.f32 %v1128_v3, %v1884_v25  ;;  %v1120_v63 = vmul.f32 %v1117_v53, %v1882_v24  ;;  %v1133_v2 = vmul.f32 %v1127_v9, %v1886_v26 }
 0x4ec   :  { %v1121_v1 = vmul.f32 %v1116_v11, %v1888_v27  ;;  %v1134_v25 = vmul.f32 %v1130_v8, %v1898_v36  ;;  %v1122_v24 = vmul.f32 %v1115_v10, %v1900_v37  ;;  %v1506_v36 = vld [vmem:[%s2128_s0 + $0x8] sm:$0xff] }
 0x558   :  { %v1140_v59 = vpop.permute.xlu0 %1139  ;;  %v1142_v62 = vpop.permute.xlu1 %1141 }
 0x559   :  { %v1151_v60 = vsel %vm65_vm0, %v1119_v58, %v1140_v59  ;;  %v1152_v0 = vsel %vm65_vm0, %v1120_v63, %v1142_v62 }
 0x55a   :  { %1256 = vmatmul.mubr.f32.vlgmr.msra.gmra.mxu1 %v1151_v60 }
 0x55b   :  { %1325 = vmatprep.mubr.msk.f32.mxu1 %vm65_vm0, %v1132_v61 }
 0x55c   :  { %v1144_v5 = vpop.permute.xlu0 %1143  ;;  %v1146_v6 = vpop.permute.xlu1 %1145 }
 0x55d   :  { %v1153_v54 = vsel %vm65_vm0, %v1121_v1, %v1144_v5  ;;  %v1154_v7 = vsel %vm65_vm0, %v1122_v24, %v1146_v6 }
 0x55e   :  { %1261 = vmatmul.mubr.f32.gmra.mxu1 %v1152_v0 }
 0x55f   :  { %1326 = vmatprep.mubr.msk.f32.mxu1 %vm65_vm0, %v1133_v2 }
 0x562   :  { %1266 = vmatmul.mubr.f32.gmra.mxu1 %v1153_v54 }
 0x563   :  { %1327 = vmatprep.mubr.msk.f32.mxu1 %vm65_vm0, %v1134_v25 }
 0x566   :  { %1271 = vmatmul.mubr.f32.gmra.mxu1 %v1154_v7 }
 0x61a   :  { %v1257_v26 = vpop.f32.mrf.mxu1 }
 0x61b   :  { %v1258_v13 = vadd.f32 %v1505_v12, %v1257_v26 }
 0x61c   :  { %v1259_v27 = vpop.f32.mrf.mxu1 }
 0x61d   :  { %1276 = vst.msk [vmem:[#allocation2] sm:$0xff] %vm65_vm0, %v1258_v13 }
 0x61e   :  { %v1262_v14 = vpop.f32.mrf.mxu1 }
 0x61f   :  { %v1263_v15 = vadd.f32 %v1506_v36, %v1262_v14 }
 0x620   :  { %v1264_v18 = vpop.f32.mrf.mxu1 }
 0x621   :  { %1277 = vst.msk [vmem:[#allocation2 + $0x8] sm:$0xff] %vm65_vm0, %v1263_v15 }
 0x622   :  { %v1267_v37 = vpop.f32.mrf.mxu1 }
 0x623   :  { %v1268_v19 = vadd.f32 %v1507_v16, %v1267_v37 }
 0x624   :  { %v1269_v20 = vpop.f32.mrf.mxu1 }
 0x625   :  { %1278 = vst.msk [vmem:[#allocation2 + $0x10] sm:$0xff] %vm65_vm0, %v1268_v19 }
 0x626   :  { %v1272_v21 = vpop.f32.mrf.mxu1 }
 0x627   :  { %v1273_v23 = vadd.f32 %v1508_v22, %v1272_v21 }
 0x628   :  { %v1274_v28 = vpop.f32.mrf.mxu1 }
 0x629   :  { %1279 = vst.msk [vmem:[#allocation2 + $0x18] sm:$0xff] %vm65_vm0, %v1273_v23 }
 0x62a   :  { %1520 = shalt.err (!%p1517_p4)
}
 0x62b   :  { %s1536_s6 = smov 128   ;;  %s1537_s19 = smov 8  }
 0x62c   :  { %1291 = dma.vmem_to_hbm [thread:$0]  %s1286_s17, 512, %s2141_s13, [#allocation3], %s1536_s6, %s1536_s6, %s1537_s19  }
 0x62d   :  { %1529 = dma.done.wait [#allocation3], 512  }
 0x62e   :  { %1530 = vsyncadd [#allocation3], 4294966784 }
 0x62f   :  { %1295 = vsyncpa [#allocation3], 1 }

</bundles_post_ra>
